<compile_context>
chip_gen: v7x
topology: tpu7x:2x2x1
jax: 0.10.0
libtpu: 0.0.40
codegen_flags: <defaults>
</compile_context>

<pallas_src>
import jax
import jax.numpy as jnp
from jax.experimental import pallas as pl
from jax.experimental.pallas import tpu as pltpu


# ----------------------------- fused Pallas kernel --------------------------- #

def flow_step_kernel(xc_ref, ws_ref, bs_ref, w2_ref, b2_ref, wf_ref, bf_ref,
                     coeff_ref, out_ref, ld_ref):
    """One batch slab (nb elements folded into lanes) per grid step; all on-chip."""
    C = out_ref.shape[1]
    Ch = C // 2
    Hs = w2_ref.shape[0]
    LN = out_ref.shape[2]

    xc = xc_ref[0]                                   # (Cin_pad, LN) = [x ; cond ; 0-pad]

    # One MXU pass produces BOTH the folded actnorm+invconv result z (rows [0,C)) and the
    # coupling-net layer-1 pre-activation (rows [C, C+Hs)); bias is a full-width VPU add.
    zz = jnp.dot(ws_ref[...], xc, preferred_element_type=jnp.float32) + bs_ref[...]
    z = zz[0:C]                                      # 8-sublane-aligned slices
    h = zz[C:C + Hs]

    c_diag = coeff_ref[0:1, :]
    c_prev = coeff_ref[1:2, :]
    c_next = coeff_ref[2:3, :]

    def aggregate(a):
        # a @ kron(I, adj) for the tridiagonal chain skeleton: 3 XLU lane-rolls + VPU FMAs
        # instead of an (LN x LN) MXU matmul.  Wrap-around across frame/batch boundaries is
        # killed by the zeros baked into c_prev / c_next at joints 0 / V-1.
        return (c_diag * a
                + c_prev * pltpu.roll(a, 1, 1)          # a[:, j-1]
                + c_next * pltpu.roll(a, LN - 1, 1))    # a[:, j+1]  (shift LN-1 == -1)

    # GCN layer 1: (channel mix already done in the stacked matmul) -> aggregate -> ReLU
    h = jnp.maximum(aggregate(h), 0.0)
    # GCN layer 2
    h = jnp.dot(w2_ref[...], h, preferred_element_type=jnp.float32) + b2_ref[...]
    h = jnp.maximum(aggregate(h), 0.0)

    # Final 1x1 conv, host-stacked so shift / sraw each land tile-aligned on rows [Ch, C)
    # of a (C, LN) slab (their rows [0, Ch) are zero and discarded below).
    hh = jnp.dot(wf_ref[...], h, preferred_element_type=jnp.float32) + bf_ref[...]
    shift_full = hh[0:C]
    sraw_full = hh[C:2 * C]

    # affine coupling:  z2' = (z2 + shift) * sigmoid(sraw + 2)
    u = sraw_full + 2.0
    denom = 1.0 + jnp.exp(-u)                        # EUP exp
    # NOTE (flagged in review): output uses approx reciprocal while logdet uses exact
    # -log(1+exp(-u)); consistent to ~1e-5 — fine at this test's tolerance.
    scale = pl.reciprocal(denom, approx=True)        # EUP reciprocal (otherwise-idle slot)

    row = jax.lax.broadcasted_iota(jnp.int32, (C, LN), 0)
    top = row < Ch
    # Single unmasked full-tile store: rows [0,Ch) = z1, rows [Ch,C) = (z2+shift)*scale.
    out_ref[0] = jnp.where(top, z, (z + shift_full) * scale)

    # log(scale) = -log(1 + exp(-u)); one per-lane partial-sum row per slab,
    # host reduces each T*V lane group back to a per-batch-element scalar.
    ld_ref[0] = jnp.sum(jnp.where(top, 0.0, -jnp.log(denom)), axis=0, keepdims=True)


# ----------------------------- FlowStep forward ------------------------------ #

def flow_step_forward(x, cond, params, logdet=None):
    """Forward pass (reverse=False): actnorm -> invconv -> affine coupling."""
    B, C, T, V = x.shape
    Ccond = cond.shape[1]
    Ch = C // 2
    TV = T * V
    pixels = TV
    Hs = params["w1"].shape[0]
    if logdet is None:
        logdet = jnp.zeros((B,), jnp.float32)

    # ---- batch folding into the lane axis ------------------------------------
    # nb batch elements per grid slab so each matmul sees LN = nb*TV >= 256 lanes
    # (fills v6e/v7x's 256-wide MXU) and the 0.35us-per-grid-step overhead shrinks;
    # keep >= 2 slabs when the batch allows so both v7x TensorCores get work.
    nb = 1
    for cand in range(min(B, max(1, 256 // TV)), 0, -1):
        if B % cand == 0:
            nb = cand
            break
    slabs = B // nb
    if slabs == 1 and nb % 2 == 0 and (nb // 2) * TV >= 256:
        nb //= 2
        slabs = 2
    LN = nb * TV

    # ---- exact host-side folds (cheap, once per call) -------------------------
    ch_scale = jnp.exp(params["an_logs"])[:, 0]                  # (C,)
    wp = params["inv_w"] * ch_scale[None, :]                     # inv_w @ diag(exp(logs))
    bp = wp @ params["an_bias"]                                  # (C, 1)
    w1a = params["w1"][:, :Ch]                                   # acts on z1
    w1b = params["w1"][:, Ch:]                                   # acts on cond
    w1a_f = w1a @ wp[:Ch, :]                                     # coupling layer-1 folded onto x
    b1_f = params["b1"] + w1a @ bp[:Ch, :]

    Cin = C + Ccond
    Cin_pad = ((Cin + 7) // 8) * 8                               # pad cond channels to 8-mult
    w_stack = jnp.zeros((C + Hs, Cin_pad), jnp.float32)
    w_stack = w_stack.at[:C, :C].set(wp)
    w_stack = w_stack.at[C:, :C].set(w1a_f)
    w_stack = w_stack.at[C:, C:Cin].set(w1b)
    b_stack = jnp.broadcast_to(jnp.concatenate([bp, b1_f], axis=0), (C + Hs, LN))
    b2_b = jnp.broadcast_to(params["b2"], (Hs, LN))

    # Final conv stacked so shift / sraw land tile-aligned at rows [Ch, C).
    w_fin = jnp.zeros((2 * C, Hs), jnp.float32)
    w_fin = w_fin.at[Ch:C, :].set(params["w3"][:Ch])
    w_fin = w_fin.at[C + Ch:2 * C, :].set(params["w3"][Ch:])
    b_fin = jnp.zeros((2 * C, 1), jnp.float32)
    b_fin = b_fin.at[Ch:C].set(params["b3"][:Ch])
    b_fin = b_fin.at[C + Ch:2 * C].set(params["b3"][Ch:])
    b_fin_b = jnp.broadcast_to(b_fin, (2 * C, LN))

    # Tridiagonal (chain-skeleton) adjacency -> 3 per-lane coefficient rows; the zeros at
    # v==0 / v==V-1 also kill frame/batch wrap-around introduced by the lane rolls.
    adj = params["adj"]
    lane_v = jnp.tile(jnp.arange(V), nb * T)                     # (LN,) joint index per lane
    c_diag = adj[lane_v, lane_v]
    c_prev = jnp.where(lane_v > 0, adj[jnp.maximum(lane_v - 1, 0), lane_v], 0.0)
    c_next = jnp.where(lane_v < V - 1, adj[jnp.minimum(lane_v + 1, V - 1), lane_v], 0.0)
    coeff = jnp.zeros((8, LN), jnp.float32)
    coeff = coeff.at[0].set(c_diag).at[1].set(c_prev).at[2].set(c_next)

    # ---- lane-dense slab layout:  (slabs, channels, nb*T*V) --------------------
    x_mat = x.reshape(B, C, TV)
    cond_mat = cond.reshape(B, Ccond, TV)
    pad = jnp.zeros((B, Cin_pad - Cin, TV), jnp.float32)
    xc = jnp.concatenate([x_mat, cond_mat, pad], axis=1)          # (B, Cin_pad, TV)
    xc = xc.reshape(slabs, nb, Cin_pad, TV).transpose(0, 2, 1, 3).reshape(slabs, Cin_pad, LN)

    out_mat, ld_part = pl.pallas_call(
        flow_step_kernel,
        out_shape=(
            jax.ShapeDtypeStruct((slabs, C, LN), jnp.float32),
            jax.ShapeDtypeStruct((slabs, 1, LN), jnp.float32),
        ),
        grid=(slabs,),
        in_specs=[
            pl.BlockSpec((1, Cin_pad, LN), lambda s: (s, 0, 0)),   # [x ; cond] slab
            pl.BlockSpec((C + Hs, Cin_pad), lambda s: (0, 0)),     # stacked entry weight
            pl.BlockSpec((C + Hs, LN), lambda s: (0, 0)),          # stacked bias (broadcast)
            pl.BlockSpec((Hs, Hs), lambda s: (0, 0)),              # w2
            pl.BlockSpec((Hs, LN), lambda s: (0, 0)),              # b2 (broadcast)
            pl.BlockSpec((2 * C, Hs), lambda s: (0, 0)),           # stacked final weight
            pl.BlockSpec((2 * C, LN), lambda s: (0, 0)),           # stacked final bias
            pl.BlockSpec((8, LN), lambda s: (0, 0)),               # tridiagonal coeff rows
        ],
        out_specs=(
            pl.BlockSpec((1, C, LN), lambda s: (s, 0, 0)),
            pl.BlockSpec((1, 1, LN), lambda s: (s, 0, 0)),
        ),
        compiler_params=pltpu.CompilerParams(dimension_semantics=("parallel",)),
    )(xc, w_stack, b_stack, params["w2"], b2_b, w_fin, b_fin_b, coeff)

    logdet = logdet + pixels * (jnp.sum(params["an_logs"]) + params["inv_log_s_sum"])
    logdet = logdet + ld_part.reshape(B, TV).sum(axis=-1)
    out = out_mat.reshape(slabs, C, nb, TV).transpose(0, 2, 1, 3).reshape(B, C, T, V)
    return out, logdet


# ------------------------- pure-JAX reference (check) ------------------------ #

def flow_step_reference(x, cond, params, logdet=None):
    B, C, T, V = x.shape
    Ch = C // 2
    if logdet is None:
        logdet = jnp.zeros((B,), jnp.float32)
    pixels = T * V
    y = (x + params["an_bias"].reshape(1, C, 1, 1)) * jnp.exp(params["an_logs"].reshape(1, C, 1, 1))
    z = jnp.einsum("oc,bctv->botv", params["inv_w"], y)
    logdet = logdet + pixels * (jnp.sum(params["an_logs"]) + params["inv_log_s_sum"])
    z1, z2 = z[:, :Ch], z[:, Ch:]
    net_in = jnp.concatenate([z1, cond], axis=1)

    def gcn(xx, w, b):
        yy = jnp.einsum("hc,bctv->bhtv", w, xx) + b.reshape(1, -1, 1, 1)
        yy = jnp.einsum("bhtu,uv->bhtv", yy, params["adj"])
        return jnp.maximum(yy, 0.0)

    h = gcn(net_in, params["w1"], params["b1"])
    h = gcn(h, params["w2"], params["b2"])
    h = jnp.einsum("hc,bctv->bhtv", params["w3"], h) + params["b3"].reshape(1, -1, 1, 1)
    shift, sraw = h[:, :Ch], h[:, Ch:]
    scale = jax.nn.sigmoid(sraw + 2.0)
    out2 = (z2 + shift) * scale
    logdet = logdet + jnp.sum(jnp.log(scale), axis=(1, 2, 3))
    return jnp.concatenate([z1, out2], axis=1), logdet


# ----------------------------------- main ----------------------------------- #

if __name__ == "__main__":
    B, C, T, V = 2, 8, 8, 16          # batch, num_in_channels, frames, joints
    Ccond, Hs = 3, 32                  # conditioning channels, hidden_size
    Ch = C // 2
    Cin = Ch + Ccond
    graph_scale = 1.0

    key = jax.random.PRNGKey(0)
    ks = jax.random.split(key, 8)

    # ActNorm params (synthetic, deterministic; actnorm_scale=1.0)
    an_bias = (0.1 * jax.random.normal(ks[0], (C, 1))).astype(jnp.float32)
    an_logs = (0.1 * jax.random.normal(ks[1], (C, 1))).astype(jnp.float32)

    # InvertibleConv1x1 with LU decomposition (recombined weight + logdet term)
    w_init = jnp.linalg.qr(jax.random.normal(ks[2], (C, C)))[0].astype(jnp.float32)
    p, l, u = jax.scipy.linalg.lu(w_init)
    s = jnp.diag(u)
    log_s = jnp.log(jnp.abs(s))
    lower = jnp.tril(l, -1) + jnp.eye(C)
    upper = jnp.triu(u, 1) + jnp.diag(jnp.sign(s) * jnp.exp(log_s))
    inv_w = (p @ lower @ upper).astype(jnp.float32)
    inv_log_s_sum = jnp.sum(log_s).astype(jnp.float32)

    # Coupling-net (GCN) params
    w1 = (jax.random.normal(ks[3], (Hs, Cin)) / jnp.sqrt(Cin)).astype(jnp.float32)
    b1 = jnp.zeros((Hs, 1), jnp.float32)
    w2 = (jax.random.normal(ks[4], (Hs, Hs)) / jnp.sqrt(Hs)).astype(jnp.float32)
    b2 = jnp.zeros((Hs, 1), jnp.float32)
    # small random instead of Glow's zeros so the GCN path is exercised (see TODO above)
    w3 = (0.01 * jax.random.normal(ks[7], (C, Hs))).astype(jnp.float32)
    b3 = jnp.zeros((C, 1), jnp.float32)

    # normalized chain-skeleton adjacency with self-loops, scaled by graph_scale
    adj = jnp.eye(V) + jnp.eye(V, k=1) + jnp.eye(V, k=-1)
    dinv = 1.0 / jnp.sqrt(jnp.sum(adj, axis=1))
    adj = (adj * dinv[:, None] * dinv[None, :] * graph_scale).astype(jnp.float32)

    params = dict(
        an_bias=an_bias, an_logs=an_logs,
        inv_w=inv_w, inv_log_s_sum=inv_log_s_sum,
        w1=w1, b1=b1, w2=w2, b2=b2, w3=w3, b3=b3, adj=adj,
    )

    x = jax.random.normal(ks[5], (B, C, T, V), jnp.float32)
    cond = jax.random.normal(ks[6], (B, Ccond, T, V), jnp.float32)

    fwd = jax.jit(flow_step_forward)
    out, logdet = fwd(x, cond, params)
    jax.block_until_ready((out, logdet))

    ref_out, ref_ld = flow_step_reference(x, cond, params)
    assert out.shape == (B, C, T, V) and logdet.shape == (B,)
    assert jnp.allclose(out, ref_out, atol=1e-2, rtol=1e-2)
    assert jnp.allclose(logdet, ref_ld, atol=1e-2, rtol=1e-2)

    print("KERNEL_OK")
</pallas_src>

<mosaic_0001>
module attributes {stable_mosaic.version = 11 : i64} {
  func.func @flow_step_kernel(%arg0: i32, %arg1: memref<1x16x256xf32, #tpu.memory_space<vmem>>, %arg2: memref<40x16xf32, #tpu.memory_space<vmem>>, %arg3: memref<40x256xf32, #tpu.memory_space<vmem>>, %arg4: memref<32x32xf32, #tpu.memory_space<vmem>>, %arg5: memref<32x256xf32, #tpu.memory_space<vmem>>, %arg6: memref<16x32xf32, #tpu.memory_space<vmem>>, %arg7: memref<16x256xf32, #tpu.memory_space<vmem>>, %arg8: memref<8x256xf32, #tpu.memory_space<vmem>>, %arg9: memref<1x8x256xf32, #tpu.memory_space<vmem>>, %arg10: memref<1x1x256xf32, #tpu.memory_space<vmem>>) attributes {dimension_semantics = [#tpu.dimension_semantics<parallel>], iteration_bounds = array<i64: 1>, scalar_prefetch = 0 : i64, scratch_operands = 0 : i64, tpu.core_type = #tpu.core_type<tc>, window_params = [{transform_indices = @transform_0, window_bounds = array<i64: 1, 16, 256>}, {pipeline_mode = #tpu.pipeline_mode<synchronous>, transform_indices = @transform_1, window_bounds = array<i64: 40, 16>}, {pipeline_mode = #tpu.pipeline_mode<synchronous>, transform_indices = @transform_2, window_bounds = array<i64: 40, 256>}, {pipeline_mode = #tpu.pipeline_mode<synchronous>, transform_indices = @transform_3, window_bounds = array<i64: 32, 32>}, {pipeline_mode = #tpu.pipeline_mode<synchronous>, transform_indices = @transform_4, window_bounds = array<i64: 32, 256>}, {pipeline_mode = #tpu.pipeline_mode<synchronous>, transform_indices = @transform_5, window_bounds = array<i64: 16, 32>}, {pipeline_mode = #tpu.pipeline_mode<synchronous>, transform_indices = @transform_6, window_bounds = array<i64: 16, 256>}, {pipeline_mode = #tpu.pipeline_mode<synchronous>, transform_indices = @transform_7, window_bounds = array<i64: 8, 256>}, {transform_indices = @transform_8, window_bounds = array<i64: 1, 8, 256>}, {transform_indices = @transform_9, window_bounds = array<i64: 1, 1, 256>}]} {
    %c0 = arith.constant 0 : index
    %c0_0 = arith.constant 0 : index
    %c0_1 = arith.constant 0 : index
    %0 = vector.load %arg1[%c0, %c0_0, %c0_1] : memref<1x16x256xf32, #tpu.memory_space<vmem>>, vector<1x16x256xf32>
    %1 = vector.shape_cast %0 : vector<1x16x256xf32> to vector<16x256xf32>
    %c0_2 = arith.constant 0 : index
    %c0_3 = arith.constant 0 : index
    %2 = vector.load %arg2[%c0_2, %c0_3] : memref<40x16xf32, #tpu.memory_space<vmem>>, vector<40x16xf32>
    %cst = arith.constant dense<0.000000e+00> : vector<40x256xf32>
    %3 = tpu.matmul %2, %1, %cst {dimension_numbers = #tpu.dot_dimension_numbers<[1], [0], [0], [1], [0, 0, 1, 1], [], []>} : vector<40x16xf32>, vector<16x256xf32>, vector<40x256xf32> -> vector<40x256xf32>
    %c0_4 = arith.constant 0 : index
    %c0_5 = arith.constant 0 : index
    %4 = vector.load %arg3[%c0_4, %c0_5] : memref<40x256xf32, #tpu.memory_space<vmem>>, vector<40x256xf32>
    %5 = arith.addf %3, %4 : vector<40x256xf32>
    %6 = vector.extract_strided_slice %5 {offsets = [0, 0], sizes = [8, 256], strides = [1, 1]} : vector<40x256xf32> to vector<8x256xf32>
    %7 = vector.extract_strided_slice %5 {offsets = [8, 0], sizes = [32, 256], strides = [1, 1]} : vector<40x256xf32> to vector<32x256xf32>
    %c0_6 = arith.constant 0 : index
    %c0_7 = arith.constant 0 : index
    %8 = vector.load %arg8[%c0_6, %c0_7] : memref<8x256xf32, #tpu.memory_space<vmem>>, vector<1x256xf32>
    %c1 = arith.constant 1 : index
    %c0_8 = arith.constant 0 : index
    %9 = vector.load %arg8[%c1, %c0_8] : memref<8x256xf32, #tpu.memory_space<vmem>>, vector<1x256xf32>
    %c2 = arith.constant 2 : index
    %c0_9 = arith.constant 0 : index
    %10 = vector.load %arg8[%c2, %c0_9] : memref<8x256xf32, #tpu.memory_space<vmem>>, vector<1x256xf32>
    %11 = vector.broadcast %8 : vector<1x256xf32> to vector<32x256xf32>
    %12 = arith.mulf %11, %7 : vector<32x256xf32>
    %c1_i32 = arith.constant 1 : i32
    %13 = tpu.dynamic_rotate %7 by %c1_i32 dim 1 : vector<32x256xf32>, i32 -> vector<32x256xf32>
    %14 = vector.broadcast %9 : vector<1x256xf32> to vector<32x256xf32>
    %15 = arith.mulf %14, %13 : vector<32x256xf32>
    %16 = arith.addf %12, %15 : vector<32x256xf32>
    %c255_i32 = arith.constant 255 : i32
    %17 = tpu.dynamic_rotate %7 by %c255_i32 dim 1 : vector<32x256xf32>, i32 -> vector<32x256xf32>
    %18 = vector.broadcast %10 : vector<1x256xf32> to vector<32x256xf32>
    %19 = arith.mulf %18, %17 : vector<32x256xf32>
    %20 = arith.addf %16, %19 : vector<32x256xf32>
    %cst_10 = arith.constant 0.000000e+00 : f32
    %21 = vector.broadcast %cst_10 : f32 to vector<32x256xf32>
    %22 = arith.maximumf %20, %21 : vector<32x256xf32>
    %c0_11 = arith.constant 0 : index
    %c0_12 = arith.constant 0 : index
    %23 = vector.load %arg4[%c0_11, %c0_12] : memref<32x32xf32, #tpu.memory_space<vmem>>, vector<32x32xf32>
    %cst_13 = arith.constant dense<0.000000e+00> : vector<32x256xf32>
    %24 = tpu.matmul %23, %22, %cst_13 {dimension_numbers = #tpu.dot_dimension_numbers<[1], [0], [0], [1], [0, 0, 1, 1], [], []>} : vector<32x32xf32>, vector<32x256xf32>, vector<32x256xf32> -> vector<32x256xf32>
    %c0_14 = arith.constant 0 : index
    %c0_15 = arith.constant 0 : index
    %25 = vector.load %arg5[%c0_14, %c0_15] : memref<32x256xf32, #tpu.memory_space<vmem>>, vector<32x256xf32>
    %26 = arith.addf %24, %25 : vector<32x256xf32>
    %27 = vector.broadcast %8 : vector<1x256xf32> to vector<32x256xf32>
    %28 = arith.mulf %27, %26 : vector<32x256xf32>
    %c1_i32_16 = arith.constant 1 : i32
    %29 = tpu.dynamic_rotate %26 by %c1_i32_16 dim 1 : vector<32x256xf32>, i32 -> vector<32x256xf32>
    %30 = vector.broadcast %9 : vector<1x256xf32> to vector<32x256xf32>
    %31 = arith.mulf %30, %29 : vector<32x256xf32>
    %32 = arith.addf %28, %31 : vector<32x256xf32>
    %c255_i32_17 = arith.constant 255 : i32
    %33 = tpu.dynamic_rotate %26 by %c255_i32_17 dim 1 : vector<32x256xf32>, i32 -> vector<32x256xf32>
    %34 = vector.broadcast %10 : vector<1x256xf32> to vector<32x256xf32>
    %35 = arith.mulf %34, %33 : vector<32x256xf32>
    %36 = arith.addf %32, %35 : vector<32x256xf32>
    %cst_18 = arith.constant 0.000000e+00 : f32
    %37 = vector.broadcast %cst_18 : f32 to vector<32x256xf32>
    %38 = arith.maximumf %36, %37 : vector<32x256xf32>
    %c0_19 = arith.constant 0 : index
    %c0_20 = arith.constant 0 : index
    %39 = vector.load %arg6[%c0_19, %c0_20] : memref<16x32xf32, #tpu.memory_space<vmem>>, vector<16x32xf32>
    %cst_21 = arith.constant dense<0.000000e+00> : vector<16x256xf32>
    %40 = tpu.matmul %39, %38, %cst_21 {dimension_numbers = #tpu.dot_dimension_numbers<[1], [0], [0], [1], [0, 0, 1, 1], [], []>} : vector<16x32xf32>, vector<32x256xf32>, vector<16x256xf32> -> vector<16x256xf32>
    %c0_22 = arith.constant 0 : index
    %c0_23 = arith.constant 0 : index
    %41 = vector.load %arg7[%c0_22, %c0_23] : memref<16x256xf32, #tpu.memory_space<vmem>>, vector<16x256xf32>
    %42 = arith.addf %40, %41 : vector<16x256xf32>
    %43 = vector.extract_strided_slice %42 {offsets = [0, 0], sizes = [8, 256], strides = [1, 1]} : vector<16x256xf32> to vector<8x256xf32>
    %44 = vector.extract_strided_slice %42 {offsets = [8, 0], sizes = [8, 256], strides = [1, 1]} : vector<16x256xf32> to vector<8x256xf32>
    %cst_24 = arith.constant 2.000000e+00 : f32
    %45 = vector.broadcast %cst_24 : f32 to vector<8x256xf32>
    %46 = arith.addf %44, %45 : vector<8x256xf32>
    %cst_25 = arith.constant 0.000000e+00 : f32
    %47 = vector.broadcast %cst_25 : f32 to vector<8x256xf32>
    %48 = arith.subf %47, %46 : vector<8x256xf32>
    %49 = math.exp %48 : vector<8x256xf32>
    %cst_26 = arith.constant 1.000000e+00 : f32
    %50 = vector.broadcast %cst_26 : f32 to vector<8x256xf32>
    %51 = arith.addf %50, %49 : vector<8x256xf32>
    %52 = tpu.reciprocal %51 {approx = true} : vector<8x256xf32> -> vector<8x256xf32>
    %53 = tpu.iota {dimensions = array<i32: 0>} : vector<8x256xi32>
    %c4_i32 = arith.constant 4 : i32
    %54 = vector.broadcast %c4_i32 : i32 to vector<8x256xi32>
    %55 = arith.cmpi slt, %53, %54 : vector<8x256xi32>
    %56 = arith.addf %6, %43 : vector<8x256xf32>
    %57 = arith.mulf %56, %52 : vector<8x256xf32>
    %58 = arith.select %55, %6, %57 : vector<8x256xi1>, vector<8x256xf32>
    %c0_27 = arith.constant 0 : index
    %c0_28 = arith.constant 0 : index
    %c0_29 = arith.constant 0 : index
    %59 = vector.load %arg9[%c0_27, %c0_28, %c0_29] : memref<1x8x256xf32, #tpu.memory_space<vmem>>, vector<1x8x256xf32>
    %60 = vector.shape_cast %59 : vector<1x8x256xf32> to vector<8x256xf32>
    %61 = vector.shape_cast %58 : vector<8x256xf32> to vector<1x8x256xf32>
    tpu.vector_store %arg9[%c0_27, %c0_28, %c0_29], %61 {strides = array<i32>} : memref<1x8x256xf32, #tpu.memory_space<vmem>>, vector<1x8x256xf32>,
    %62 = math.log %51 : vector<8x256xf32>
    %cst_30 = arith.constant 0.000000e+00 : f32
    %63 = vector.broadcast %cst_30 : f32 to vector<8x256xf32>
    %64 = arith.subf %63, %62 : vector<8x256xf32>
    %cst_31 = arith.constant 0.000000e+00 : f32
    %65 = vector.broadcast %cst_31 : f32 to vector<8x256xf32>
    %66 = arith.select %55, %65, %64 : vector<8x256xi1>, vector<8x256xf32>
    %cst_32 = arith.constant dense<0.000000e+00> : vector<256xf32>
    %67 = vector.multi_reduction <add>, %66, %cst_32 [0] : vector<8x256xf32> to vector<256xf32>
    %68 = vector.shape_cast %67 : vector<256xf32> to vector<1x256xf32>
    %c0_33 = arith.constant 0 : index
    %c0_34 = arith.constant 0 : index
    %c0_35 = arith.constant 0 : index
    %69 = vector.load %arg10[%c0_33, %c0_34, %c0_35] : memref<1x1x256xf32, #tpu.memory_space<vmem>>, vector<1x1x256xf32>
    %70 = vector.shape_cast %69 : vector<1x1x256xf32> to vector<1x256xf32>
    %71 = vector.shape_cast %68 : vector<1x256xf32> to vector<1x1x256xf32>
    tpu.vector_store %arg10[%c0_33, %c0_34, %c0_35], %71 {strides = array<i32>} : memref<1x1x256xf32, #tpu.memory_space<vmem>>, vector<1x1x256xf32>,
    return
  }
  func.func @transform_0(%arg0: i32) -> (i32, i32, i32) {
    %c0_i32 = arith.constant 0 : i32
    %c0_i32_0 = arith.constant 0 : i32
    %c0_i32_1 = arith.constant 0 : i32
    return %arg0, %c0_i32, %c0_i32_0 : i32, i32, i32
  }
  func.func @transform_1(%arg0: i32) -> (i32, i32) {
    %c0_i32 = arith.constant 0 : i32
    %c0_i32_0 = arith.constant 0 : i32
    %c0_i32_1 = arith.constant 0 : i32
    return %c0_i32, %c0_i32_0 : i32, i32
  }
  func.func @transform_2(%arg0: i32) -> (i32, i32) {
    %c0_i32 = arith.constant 0 : i32
    %c0_i32_0 = arith.constant 0 : i32
    %c0_i32_1 = arith.constant 0 : i32
    return %c0_i32, %c0_i32_0 : i32, i32
  }
  func.func @transform_3(%arg0: i32) -> (i32, i32) {
    %c0_i32 = arith.constant 0 : i32
    %c0_i32_0 = arith.constant 0 : i32
    %c0_i32_1 = arith.constant 0 : i32
    return %c0_i32, %c0_i32_0 : i32, i32
  }
  func.func @transform_4(%arg0: i32) -> (i32, i32) {
    %c0_i32 = arith.constant 0 : i32
    %c0_i32_0 = arith.constant 0 : i32
    %c0_i32_1 = arith.constant 0 : i32
    return %c0_i32, %c0_i32_0 : i32, i32
  }
  func.func @transform_5(%arg0: i32) -> (i32, i32) {
    %c0_i32 = arith.constant 0 : i32
    %c0_i32_0 = arith.constant 0 : i32
    %c0_i32_1 = arith.constant 0 : i32
    return %c0_i32, %c0_i32_0 : i32, i32
  }
  func.func @transform_6(%arg0: i32) -> (i32, i32) {
    %c0_i32 = arith.constant 0 : i32
    %c0_i32_0 = arith.constant 0 : i32
    %c0_i32_1 = arith.constant 0 : i32
    return %c0_i32, %c0_i32_0 : i32, i32
  }
  func.func @transform_7(%arg0: i32) -> (i32, i32) {
    %c0_i32 = arith.constant 0 : i32
    %c0_i32_0 = arith.constant 0 : i32
    %c0_i32_1 = arith.constant 0 : i32
    return %c0_i32, %c0_i32_0 : i32, i32
  }
  func.func @transform_8(%arg0: i32) -> (i32, i32, i32) {
    %c0_i32 = arith.constant 0 : i32
    %c0_i32_0 = arith.constant 0 : i32
    %c0_i32_1 = arith.constant 0 : i32
    return %arg0, %c0_i32, %c0_i32_0 : i32, i32, i32
  }
  func.func @transform_9(%arg0: i32) -> (i32, i32, i32) {
    %c0_i32 = arith.constant 0 : i32
    %c0_i32_0 = arith.constant 0 : i32
    %c0_i32_1 = arith.constant 0 : i32
    return %arg0, %c0_i32, %c0_i32_0 : i32, i32, i32
  }
}

</mosaic_0001>

<bundles_post_ra>
// kernel: flow_step_forward.1
= control target key start
LH: loop header
LB: loop body
LE: loop exit
PB: predicated region body
PF: predicated region fallthrough
CT: control target
= control target key end

     0   :  { %v725_v3 = vmov 0.0   ;;  %vm50_vm0 = vcmask 130048   ;;  %s726_s10 = smov 1   ;;  %s727_s13 = smov 127   ;;  %v167_v38 = vlaneseq  ;;  %vm311_vm3 = vcmask 261120   ;;  %s1153_s0 = inlined_call_operand.vmem [shape: f32[1,16,256], index: 0, kind: input, shape index: {}]   ;;  %s1154_s1 = inlined_call_operand.vmem [shape: f32[40,16], index: 1, kind: input, shape index: {}]   ;;  %s1155_s2 = inlined_call_operand.vmem [shape: f32[40,256], index: 2, kind: input, shape index: {}]   ;;  %s1156_s7 = inlined_call_operand.vmem [shape: f32[8,256], index: 7, kind: input, shape index: {}]   ;;  %s1157_s3 = inlined_call_operand.vmem [shape: f32[32,32], index: 3, kind: input, shape index: {}]   ;;  %s1158_s4 = inlined_call_operand.vmem [shape: f32[32,256], index: 4, kind: input, shape index: {}]   ;;  %s1159_s5 = inlined_call_operand.vmem [shape: f32[16,32], index: 5, kind: input, shape index: {}]   ;;  %s1160_s6 = inlined_call_operand.vmem [shape: f32[16,256], index: 6, kind: input, shape index: {}]   ;;  %s1161_s8 = inlined_call_operand.vmem [shape: f32[1,8,256], index: 8, kind: output, shape index: {0}]   ;;  %s1162_s9 = inlined_call_operand.vmem [shape: f32[1,1,256], index: 9, kind: output, shape index: {1}]  }
   0x1   :  { %v32_v0 = vld [vmem:[%s1153_s0 + $0x8] sm:$0xff]  ;;  %v34_v1 = vld [vmem:[%s1153_s0 + $0x18] sm:$0xff]  ;;  %v31_v2 = vld [vmem:[%s1153_s0] sm:$0xff]  ;;  %130 = vmatprep.mubr.f32.mxu0 %v725_v3  ;;  %388 = vmatprep.mubr.f32.mxu1 %v725_v3 }
   0x2   :  { %v685_v4 = vpack.c.bf16 %v34_v1, %v32_v0  ;;  %v33_v5 = vld [vmem:[%s1153_s0 + $0x10] sm:$0xff]  ;;  %v35_v7 = vld [vmem:[%s1154_s1] sm:$0xff]  ;;  %v36_v8 = vld [vmem:[%s1154_s1 + $0x8] sm:$0xff]  ;;  %v882_v39 = vshrl.u32 %v167_v38, 7  ;;  %v885_v40 = vand.u32 127, %v167_v38  ;;  %vm661_vm5 = vcmp.lt.s32.totalorder %v167_v38, 256 }
   0x3   :  { %v687_v6 = vpack.c.bf16 %v33_v5, %v31_v2  ;;  %v37_v9 = vld [vmem:[%s1154_s1 + $0x10] sm:$0xff]  ;;  %v38_v10 = vld [vmem:[%s1154_s1 + $0x18] sm:$0xff]  ;;  %v39_v11 = vld [vmem:[%s1154_s1 + $0x20] sm:$0xff] }
   0x4   :  { %686 = vmatprep.subr.bf16.mxu0 %v685_v4  ;;  %v42_v14 = vld [vmem:[%s1155_s2 + $0x10] sm:$0xff]  ;;  %v43_v15 = vld [vmem:[%s1155_s2 + $0x18] sm:$0xff]  ;;  %v44_v20 = vld [vmem:[%s1155_s2 + $0x20] sm:$0xff]  ;;  %v169_v44 = vsub.s32 0, %v882_v39  ;;  %vm203_vm1 = vcmp.lt.s32.totalorder %v885_v40, 1  ;;  %v173_v45 = vsub.s32 1, %v882_v39 }
   0x5   :  { %688 = vmatpush1.bf16.msra.mxu0 %v687_v6  ;;  %v45_v24 = vld [vmem:[%s1155_s2 + $0x28] sm:$0xff]  ;;  %v48_v29 = vld [vmem:[%s1155_s2 + $0x40] sm:$0xff]  ;;  %v46_v31 = vld [vmem:[%s1155_s2 + $0x30] sm:$0xff]  ;;  %vm255_vm2 = vcmp.lt.s32.totalorder %v885_v40, 127  ;;  %vm612_vm4 = vcmp.lt.s32.totalorder %v882_v39, 4 }
   0x6   :  { %v47_v34 = vld [vmem:[%s1155_s2 + $0x38] sm:$0xff]  ;;  %v49_v35 = vld [vmem:[%s1155_s2 + $0x48] sm:$0xff]  ;;  %v509_v40 = vld [vmem:[%s1159_s5] sm:$0xff] }
   0x7   :  { %v677_v43 = vld [vmem:[%s1156_s7 + $0x1] ss:$8 sm:$0x3]  ;;  %v161_v46 = vld [vmem:[%s1156_s7] ss:$8 sm:$0x3] }
   0x8   :  { %672 = vmatmul.mubr.msk.f32.vlgmr.msra.gmra.mrb[0].mxu0 %vm50_vm0, %v35_v7  ;;  %v896_v48 = vrot.slane %v677_v43, %v169_v44  ;;  %v898_v49 = vrot.slane %v677_v43, %v173_v45  ;;  %v678_v51 = vld [vmem:[%s1156_s7 + $0x2] ss:$8 sm:$0x3]  ;;  %v908_v54 = vrot.slane %v161_v46, %v169_v44  ;;  %v910_v55 = vrot.slane %v161_v46, %v173_v45 }
   0x9   :  { %136 = vmatprep.mubr.f32.mxu0 %v725_v3  ;;  %v912_v56 = vrot.slane %v678_v51, %v169_v44  ;;  %v914_v57 = vrot.slane %v678_v51, %v173_v45 }
   0xc   :  { %673 = vmatmul.mubr.msk.f32.gmra.mrb[2].mxu0 %vm50_vm0, %v36_v8 }
   0xd   :  { %142 = vmatprep.mubr.f32.mxu0 %v725_v3 }
  0x10   :  { %674 = vmatmul.mubr.msk.f32.gmra.mrb[4].mxu0 %vm50_vm0, %v37_v9 }
  0x11   :  { %148 = vmatprep.mubr.f32.mxu0 %v725_v3 }
  0x14   :  { %675 = vmatmul.mubr.msk.f32.gmra.mrb[6].mxu0 %vm50_vm0, %v38_v10 }
  0x15   :  { %154 = vmatprep.mubr.f32.mxu0 %v725_v3 }
  0x18   :  { %676 = vmatmul.mubr.msk.f32.gmra.mrb[8].mxu0 %vm50_vm0, %v39_v11 }
  0x19   :  { %585 = vmatprep.mubr.f32.mxu0 %v725_v3 }
  0xdb   :  { %v813_v12 = vpop.f32.mrb[0].mxu0 }
  0xdc   :  { %v815_v13 = vpop.f32.mrb[1].mxu0 }
  0xdf   :  { %v138_v16 = vpop.f32.mrb[2].mxu0 }
  0xe0   :  { %v823_v17 = vadd.f32 %v138_v16, %v42_v14  ;;  %v140_v18 = vpop.f32.mrb[3].mxu0 }
  0xe1   :  { %v825_v19 = vadd.f32 %v140_v18, %v43_v15 }
  0xe2   :  { %185 = vrot.lane.b32.xlu0 %v823_v17, %s726_s10  ;;  %v177_v0 = vmul.f32 %v908_v54, %v823_v17 }
  0xe3   :  { %v144_v21 = vpop.f32.mrb[4].mxu0  ;;  %193 = vrot.lane.b32.xlu1 %v825_v19, %s726_s10  ;;  %v178_v1 = vmul.f32 %v910_v55, %v825_v19 }
  0xe4   :  { %v145_v22 = vadd.f32 %v144_v21, %v44_v20  ;;  %v146_v23 = vpop.f32.mrb[5].mxu0 }
  0xe5   :  { %v147_v27 = vadd.f32 %v146_v23, %v45_v24 }
  0xe6   :  { %239 = vrot.lane.b32.xlu0 %v823_v17, %s727_s13  ;;  %v179_v2 = vmul.f32 %v908_v54, %v145_v22 }
  0xe7   :  { %241 = vrot.lane.b32.xlu1 %v145_v22, %s727_s13  ;;  %v150_v25 = vpop.f32.mrb[6].mxu0  ;;  %v180_v4 = vmul.f32 %v910_v55, %v147_v27 }
  0xe8   :  { %v152_v26 = vpop.f32.mrb[7].mxu0  ;;  %v853_v33 = vadd.f32 %v150_v25, %v46_v31 }
  0xe9   :  { %v869_v36 = vadd.f32 %v152_v26, %v47_v34 }
  0xea   :  { %247 = vrot.lane.b32.xlu0 %v825_v19, %s727_s13 }
  0xeb   :  { %195 = vrot.lane.b32.xlu1 %v147_v27, %s726_s10  ;;  %v156_v28 = vpop.f32.mrb[8].mxu0 }
  0xec   :  { %v158_v30 = vpop.f32.mrb[9].mxu0  ;;  %v850_v32 = vadd.f32 %v156_v28, %v48_v29 }
  0xed   :  { %v871_v37 = vadd.f32 %v158_v30, %v49_v35 }
  0xee   :  { %187 = vrot.lane.b32.xlu0 %v145_v22, %s726_s10 }
  0xef   :  { %249 = vrot.lane.b32.xlu1 %v147_v27, %s727_s13 }
  0xf2   :  { %189 = vrot.lane.b32.xlu0 %v853_v33, %s726_s10 }
  0xf3   :  { %191 = vrot.lane.b32.xlu1 %v850_v32, %s726_s10 }
  0xf6   :  { %243 = vrot.lane.b32.xlu0 %v853_v33, %s727_s13 }
  0xf7   :  { %245 = vrot.lane.b32.xlu1 %v850_v32, %s727_s13 }
  0xfa   :  { %197 = vrot.lane.b32.xlu0 %v869_v36, %s726_s10 }
  0xfb   :  { %199 = vrot.lane.b32.xlu1 %v871_v37, %s726_s10 }
  0xfe   :  { %251 = vrot.lane.b32.xlu0 %v869_v36, %s727_s13 }
  0xff   :  { %253 = vrot.lane.b32.xlu1 %v871_v37, %s727_s13 }
 0x154   :  { %v186_v41 = vpop.permute.xlu0 %185 }
 0x155   :  { %v194_v42 = vpop.permute.xlu1 %193 }
 0x156   :  { %v204_v52 = vsel %vm203_vm1, %v186_v41, %v194_v42  ;;  %v208_v53 = vsel %vm203_vm1, %v194_v42, %v186_v41 }
 0x157   :  { %v223_v59 = vmul.f32 %v896_v48, %v208_v53  ;;  %v224_v60 = vmul.f32 %v898_v49, %v204_v52 }
 0x158   :  { %v240_v47 = vpop.permute.xlu0 %239 }
 0x159   :  { %v242_v50 = vpop.permute.xlu1 %241  ;;  %v231_v8 = vadd.f32 %v223_v59, %v177_v0  ;;  %v232_v14 = vadd.f32 %v224_v60, %v178_v1  ;;  %v182_v59 = vmul.f32 %v910_v55, %v869_v36 }
 0x15c   :  { %v248_v58 = vpop.permute.xlu0 %247 }
 0x15d   :  { %v256_v61 = vsel %vm255_vm2, %v240_v47, %v248_v58  ;;  %v260_v62 = vsel %vm255_vm2, %v248_v58, %v240_v47  ;;  %v196_v63 = vpop.permute.xlu1 %195  ;;  %v181_v58 = vmul.f32 %v908_v54, %v853_v33 }
 0x15e   :  { %v275_v5 = vmul.f32 %v912_v56, %v256_v61  ;;  %v276_v6 = vmul.f32 %v914_v57, %v260_v62  ;;  %v183_v62 = vmul.f32 %v908_v54, %v850_v32 }
 0x160   :  { %v188_v7 = vpop.permute.xlu0 %187  ;;  %v284_v24 = vadd.f32 %v276_v6, %v232_v14  ;;  %v283_v25 = vadd.f32 %v275_v5, %v231_v8 }
 0x161   :  { %v205_v9 = vsel %vm203_vm1, %v188_v7, %v196_v63  ;;  %v209_v10 = vsel %vm203_vm1, %v196_v63, %v188_v7  ;;  %v250_v11 = vpop.permute.xlu1 %249  ;;  %v184_v63 = vmul.f32 %v910_v55, %v871_v37 }
 0x162   :  { %v225_v15 = vmul.f32 %v896_v48, %v209_v10  ;;  %v226_v16 = vmul.f32 %v898_v49, %v205_v9  ;;  %v257_v17 = vsel %vm255_vm2, %v242_v50, %v250_v11  ;;  %v261_v18 = vsel %vm255_vm2, %v250_v11, %v242_v50 }
 0x163   :  { %v277_v19 = vmul.f32 %v912_v56, %v257_v17  ;;  %v278_v20 = vmul.f32 %v914_v57, %v261_v18  ;;  %v292_v30 = vmax.f32 %v284_v24, 0.0  ;;  %v291_v34 = vmax.f32 %v283_v25, 0.0  ;;  %v300_v24 = vld [vmem:[%s1157_s3 + $0x8] sm:$0xff]  ;;  %v301_v25 = vld [vmem:[%s1157_s3 + $0x10] sm:$0xff] }
 0x164   :  { %v233_v21 = vadd.f32 %v225_v15, %v179_v2  ;;  %v190_v22 = vpop.permute.xlu0 %189  ;;  %v234_v23 = vadd.f32 %v226_v16, %v180_v4 }
 0x165   :  { %v192_v26 = vpop.permute.xlu1 %191 }
 0x166   :  { %v286_v27 = vadd.f32 %v278_v20, %v234_v23  ;;  %v285_v28 = vadd.f32 %v277_v19, %v233_v21  ;;  %v299_v23 = vld [vmem:[%s1157_s3] sm:$0xff] }
 0x168   :  { %v244_v29 = vpop.permute.xlu0 %243  ;;  %v294_v31 = vmax.f32 %v286_v27, 0.0  ;;  %v293_v35 = vmax.f32 %v285_v28, 0.0  ;;  %v303_v27 = vld [vmem:[%s1158_s4] sm:$0xff] }
 0x169   :  { %v246_v41 = vpop.permute.xlu1 %245 }
 0x16a   :  { %v689_v42 = vpack.c.bf16 %v294_v31, %v292_v30  ;;  %v691_v43 = vpack.c.bf16 %v293_v35, %v291_v34  ;;  %v305_v31 = vld [vmem:[%s1158_s4 + $0x10] sm:$0xff] }
 0x16c   :  { %690 = vmatprep.subr.bf16.mxu1 %v689_v42  ;;  %v198_v44 = vpop.permute.xlu0 %197 }
 0x16d   :  { %v206_v45 = vsel %vm203_vm1, %v190_v22, %v198_v44  ;;  %v210_v46 = vsel %vm203_vm1, %v198_v44, %v190_v22  ;;  %v200_v47 = vpop.permute.xlu1 %199  ;;  %692 = vmatpush1.bf16.msra.mxu1 %v691_v43 }
 0x16e   :  { %v227_v50 = vmul.f32 %v896_v48, %v210_v46  ;;  %v228_v51 = vmul.f32 %v898_v49, %v206_v45  ;;  %v207_v52 = vsel %vm203_vm1, %v192_v26, %v200_v47  ;;  %v211_v53 = vsel %vm203_vm1, %v200_v47, %v192_v26  ;;  %v302_v26 = vld [vmem:[%s1157_s3 + $0x18] sm:$0xff]  ;;  %v307_v46 = vld [vmem:[%s1158_s4 + $0x20] sm:$0xff] }
 0x16f   :  { %v229_v60 = vmul.f32 %v896_v48, %v211_v53  ;;  %v230_v61 = vmul.f32 %v898_v49, %v207_v52  ;;  %v306_v45 = vld [vmem:[%s1158_s4 + $0x18] sm:$0xff]  ;;  %v309_v53 = vld [vmem:[%s1158_s4 + $0x30] sm:$0xff] }
 0x170   :  { %v252_v0 = vpop.permute.xlu0 %251  ;;  %v235_v1 = vadd.f32 %v227_v50, %v181_v58  ;;  %v236_v2 = vadd.f32 %v228_v51, %v182_v59  ;;  %v308_v59 = vld [vmem:[%s1158_s4 + $0x28] sm:$0xff] }
 0x171   :  { %v258_v4 = vsel %vm255_vm2, %v244_v29, %v252_v0  ;;  %v262_v33 = vsel %vm255_vm2, %v252_v0, %v244_v29  ;;  %v254_v36 = vpop.permute.xlu1 %253  ;;  %v237_v7 = vadd.f32 %v229_v60, %v183_v62  ;;  %v238_v8 = vadd.f32 %v230_v61, %v184_v63  ;;  %v310_v61 = vld [vmem:[%s1158_s4 + $0x38] sm:$0xff] }
 0x172   :  { %v279_v5 = vmul.f32 %v912_v56, %v258_v4  ;;  %v280_v6 = vmul.f32 %v914_v57, %v262_v33  ;;  %v259_v32 = vsel %vm255_vm2, %v246_v41, %v254_v36  ;;  %v263_v37 = vsel %vm255_vm2, %v254_v36, %v246_v41 }
 0x173   :  { %v281_v9 = vmul.f32 %v912_v56, %v259_v32  ;;  %v282_v10 = vmul.f32 %v914_v57, %v263_v37 }
 0x174   :  { %v287_v11 = vadd.f32 %v279_v5, %v235_v1  ;;  %v288_v14 = vadd.f32 %v280_v6, %v236_v2 }
 0x175   :  { %v289_v15 = vadd.f32 %v281_v9, %v237_v7  ;;  %v290_v16 = vadd.f32 %v282_v10, %v238_v8 }
 0x176   :  { %v295_v17 = vmax.f32 %v287_v11, 0.0  ;;  %v296_v18 = vmax.f32 %v288_v14, 0.0 }
 0x177   :  { %v297_v19 = vmax.f32 %v289_v15, 0.0  ;;  %v298_v20 = vmax.f32 %v290_v16, 0.0 }
 0x179   :  { %v693_v21 = vpack.c.bf16 %v298_v20, %v296_v18  ;;  %v695_v22 = vpack.c.bf16 %v297_v19, %v295_v17 }
 0x17b   :  { %694 = vmatprep.subr.bf16.mxu1 %v693_v21 }
 0x17c   :  { %696 = vmatpush1.bf16.msra.mxu1 %v695_v22 }
 0x17f   :  { %679 = vmatmul.mubr.msk.f32.vlgmr.msra.gmra.mrb[0].mxu1 %vm311_vm3, %v299_v23 }
 0x180   :  { %394 = vmatprep.mubr.f32.mxu1 %v725_v3 }
 0x183   :  { %680 = vmatmul.mubr.msk.f32.gmra.mrb[2].mxu1 %vm311_vm3, %v300_v24 }
 0x184   :  { %400 = vmatprep.mubr.f32.mxu1 %v725_v3 }
 0x187   :  { %681 = vmatmul.mubr.msk.f32.gmra.mrb[4].mxu1 %vm311_vm3, %v301_v25 }
 0x188   :  { %406 = vmatprep.mubr.f32.mxu1 %v725_v3 }
 0x18b   :  { %682 = vmatmul.mubr.msk.f32.gmra.mrb[6].mxu1 %vm311_vm3, %v302_v26 }
 0x18c   :  { %591 = vmatprep.mubr.f32.mxu1 %v725_v3  ;;  %v304_v3 = vld [vmem:[%s1158_s4 + $0x8] sm:$0xff] }
 0x252   :  { %v390_v28 = vpop.f32.mrb[0].mxu1 }
 0x253   :  { %v391_v29 = vadd.f32 %v390_v28, %v303_v27  ;;  %v392_v30 = vpop.f32.mrb[1].mxu1 }
 0x254   :  { %v393_v43 = vadd.f32 %v392_v30, %v304_v3 }
 0x255   :  { %421 = vrot.lane.b32.xlu0 %v391_v29, %s726_s10  ;;  %v413_v5 = vmul.f32 %v391_v29, %v908_v54 }
 0x256   :  { %v396_v34 = vpop.f32.mrb[2].mxu1  ;;  %v414_v6 = vmul.f32 %v393_v43, %v910_v55 }
 0x257   :  { %v397_v35 = vadd.f32 %v396_v34, %v305_v31  ;;  %v398_v41 = vpop.f32.mrb[3].mxu1 }
 0x258   :  { %v399_v50 = vadd.f32 %v398_v41, %v306_v45 }
 0x259   :  { %423 = vrot.lane.b32.xlu1 %v397_v35, %s726_s10  ;;  %461 = vrot.lane.b32.xlu0 %v391_v29, %s727_s13  ;;  %v415_v19 = vmul.f32 %v397_v35, %v908_v54 }
 0x25a   :  { %v402_v42 = vpop.f32.mrb[4].mxu1  ;;  %v416_v20 = vmul.f32 %v399_v50, %v910_v55 }
 0x25b   :  { %v404_v44 = vpop.f32.mrb[5].mxu1  ;;  %v1014_v52 = vadd.f32 %v402_v42, %v307_v46 }
 0x25c   :  { %v405_v60 = vadd.f32 %v404_v44, %v308_v59 }
 0x25d   :  { %463 = vrot.lane.b32.xlu1 %v397_v35, %s727_s13  ;;  %429 = vrot.lane.b32.xlu0 %v393_v43, %s726_s10 }
 0x25e   :  { %v408_v47 = vpop.f32.mrb[6].mxu1 }
 0x25f   :  { %v410_v51 = vpop.f32.mrb[7].mxu1  ;;  %v1021_v58 = vadd.f32 %v408_v47, %v309_v53 }
 0x260   :  { %v1039_v62 = vadd.f32 %v410_v51, %v310_v61 }
 0x261   :  { %431 = vrot.lane.b32.xlu1 %v399_v50, %s726_s10  ;;  %469 = vrot.lane.b32.xlu0 %v393_v43, %s727_s13 }
 0x265   :  { %471 = vrot.lane.b32.xlu1 %v399_v50, %s727_s13  ;;  %425 = vrot.lane.b32.xlu0 %v1014_v52, %s726_s10 }
 0x269   :  { %427 = vrot.lane.b32.xlu1 %v1021_v58, %s726_s10  ;;  %465 = vrot.lane.b32.xlu0 %v1014_v52, %s727_s13 }
 0x26d   :  { %467 = vrot.lane.b32.xlu1 %v1021_v58, %s727_s13  ;;  %433 = vrot.lane.b32.xlu0 %v405_v60, %s726_s10 }
 0x271   :  { %435 = vrot.lane.b32.xlu1 %v1039_v62, %s726_s10  ;;  %473 = vrot.lane.b32.xlu0 %v405_v60, %s727_s13 }
 0x275   :  { %475 = vrot.lane.b32.xlu1 %v1039_v62, %s727_s13 }
 0x2c7   :  { %v422_v63 = vpop.permute.xlu0 %421 }
 0x2cb   :  { %v424_v0 = vpop.permute.xlu1 %423  ;;  %v462_v1 = vpop.permute.xlu0 %461 }
 0x2cf   :  { %v464_v2 = vpop.permute.xlu1 %463  ;;  %v430_v4 = vpop.permute.xlu0 %429 }
 0x2d0   :  { %v437_v33 = vsel %vm203_vm1, %v422_v63, %v430_v4  ;;  %v441_v36 = vsel %vm203_vm1, %v430_v4, %v422_v63  ;;  %v417_v63 = vmul.f32 %v1014_v52, %v908_v54 }
 0x2d1   :  { %v445_v32 = vmul.f32 %v441_v36, %v896_v48  ;;  %v446_v37 = vmul.f32 %v437_v33, %v898_v49 }
 0x2d3   :  { %v432_v7 = vpop.permute.xlu1 %431  ;;  %v470_v8 = vpop.permute.xlu0 %469  ;;  %v453_v21 = vadd.f32 %v445_v32, %v413_v5  ;;  %v454_v22 = vadd.f32 %v446_v37, %v414_v6 }
 0x2d4   :  { %v438_v9 = vsel %vm203_vm1, %v424_v0, %v432_v7  ;;  %v442_v10 = vsel %vm203_vm1, %v432_v7, %v424_v0  ;;  %v477_v11 = vsel %vm255_vm2, %v462_v1, %v470_v8  ;;  %v481_v14 = vsel %vm255_vm2, %v470_v8, %v462_v1 }
 0x2d5   :  { %v447_v15 = vmul.f32 %v442_v10, %v896_v48  ;;  %v448_v16 = vmul.f32 %v438_v9, %v898_v49  ;;  %v485_v17 = vmul.f32 %v477_v11, %v912_v56  ;;  %v486_v18 = vmul.f32 %v481_v14, %v914_v57 }
 0x2d6   :  { %v418_v0 = vmul.f32 %v405_v60, %v910_v55  ;;  %v419_v8 = vmul.f32 %v1021_v58, %v908_v54  ;;  %v420_v9 = vmul.f32 %v1039_v62, %v910_v55 }
 0x2d7   :  { %v472_v23 = vpop.permute.xlu1 %471  ;;  %v426_v24 = vpop.permute.xlu0 %425  ;;  %v455_v25 = vadd.f32 %v447_v15, %v415_v19  ;;  %v456_v26 = vadd.f32 %v448_v16, %v416_v20  ;;  %v493_v29 = vadd.f32 %v485_v17, %v453_v21  ;;  %v494_v30 = vadd.f32 %v486_v18, %v454_v22 }
 0x2d8   :  { %v478_v27 = vsel %vm255_vm2, %v464_v2, %v472_v23  ;;  %v482_v28 = vsel %vm255_vm2, %v472_v23, %v464_v2 }
 0x2d9   :  { %v487_v31 = vmul.f32 %v478_v27, %v912_v56  ;;  %v488_v34 = vmul.f32 %v482_v28, %v914_v57  ;;  %v501_v43 = vmax.f32 %v493_v29, 0.0  ;;  %v502_v44 = vmax.f32 %v494_v30, 0.0  ;;  %v41_v27 = vld [vmem:[%s1155_s2 + $0x8] sm:$0xff]  ;;  %v514_v29 = vld [vmem:[%s1160_s6 + $0x18] sm:$0xff] }
 0x2da   :  { %v512_v28 = vld [vmem:[%s1160_s6 + $0x8] sm:$0xff] }
 0x2db   :  { %v495_v35 = vadd.f32 %v487_v31, %v455_v25  ;;  %v496_v41 = vadd.f32 %v488_v34, %v456_v26  ;;  %v428_v3 = vpop.permute.xlu1 %427  ;;  %v466_v42 = vpop.permute.xlu0 %465  ;;  %v511_v25 = vld [vmem:[%s1160_s6] sm:$0xff]  ;;  %v513_v26 = vld [vmem:[%s1160_s6 + $0x10] sm:$0xff] }
 0x2dd   :  { %v503_v45 = vmax.f32 %v495_v35, 0.0  ;;  %v504_v46 = vmax.f32 %v496_v41, 0.0 }
 0x2df   :  { %v699_v47 = vpack.c.bf16 %v503_v45, %v501_v43  ;;  %v468_v50 = vpop.permute.xlu1 %467  ;;  %v434_v51 = vpop.permute.xlu0 %433  ;;  %v697_v53 = vpack.c.bf16 %v504_v46, %v502_v44  ;;  %v135_v43 = vadd.f32 %v815_v13, %v41_v27 }
 0x2e0   :  { %v439_v59 = vsel %vm203_vm1, %v426_v24, %v434_v51  ;;  %v443_v61 = vsel %vm203_vm1, %v434_v51, %v426_v24 }
 0x2e1   :  { %698 = vmatprep.subr.bf16.mxu0 %v697_v53  ;;  %705 = vmatprep.subr.bf16.mxu1 %v697_v53  ;;  %v449_v1 = vmul.f32 %v443_v61, %v896_v48  ;;  %v450_v2 = vmul.f32 %v439_v59, %v898_v49 }
 0x2e2   :  { %700 = vmatpush1.bf16.msra.mxu0 %v699_v47  ;;  %707 = vmatpush1.bf16.msra.mxu1 %v699_v47 }
 0x2e3   :  { %v436_v4 = vpop.permute.xlu1 %435  ;;  %v474_v33 = vpop.permute.xlu0 %473  ;;  %v457_v10 = vadd.f32 %v449_v1, %v417_v63  ;;  %v458_v11 = vadd.f32 %v450_v2, %v418_v0 }
 0x2e4   :  { %v440_v36 = vsel %vm203_vm1, %v428_v3, %v436_v4  ;;  %v444_v5 = vsel %vm203_vm1, %v436_v4, %v428_v3  ;;  %v479_v6 = vsel %vm255_vm2, %v466_v42, %v474_v33  ;;  %v483_v52 = vsel %vm255_vm2, %v474_v33, %v466_v42 }
 0x2e5   :  { %v451_v60 = vmul.f32 %v444_v5, %v896_v48  ;;  %v452_v32 = vmul.f32 %v440_v36, %v898_v49  ;;  %v489_v37 = vmul.f32 %v479_v6, %v912_v56  ;;  %v490_v7 = vmul.f32 %v483_v52, %v914_v57 }
 0x2e7   :  { %v476_v14 = vpop.permute.xlu1 %475  ;;  %v459_v15 = vadd.f32 %v451_v60, %v419_v8  ;;  %v460_v16 = vadd.f32 %v452_v32, %v420_v9  ;;  %v497_v17 = vadd.f32 %v489_v37, %v457_v10  ;;  %v498_v18 = vadd.f32 %v490_v7, %v458_v11 }
 0x2e8   :  { %v480_v48 = vsel %vm255_vm2, %v468_v50, %v476_v14  ;;  %v484_v49 = vsel %vm255_vm2, %v476_v14, %v468_v50 }
 0x2e9   :  { %v491_v19 = vmul.f32 %v480_v48, %v912_v56  ;;  %v492_v54 = vmul.f32 %v484_v49, %v914_v57  ;;  %v505_v55 = vmax.f32 %v497_v17, 0.0  ;;  %v506_v62 = vmax.f32 %v498_v18, 0.0  ;;  %v510_v56 = vld [vmem:[%s1159_s5 + $0x8] sm:$0xff]  ;;  %v40_v57 = vld [vmem:[%s1155_s2] sm:$0xff] }
 0x2ea   :  { %v133_v34 = vadd.f32 %v813_v12, %v40_v57  ;;  %v728_v49 = vmov 1966171168  }
 0x2eb   :  { %v499_v58 = vadd.f32 %v491_v19, %v459_v15  ;;  %v500_v20 = vadd.f32 %v492_v54, %v460_v16  ;;  %v645_v17 = vunpack.c.l.s4 %v728_v49 }
 0x2ed   :  { %v507_v21 = vmax.f32 %v499_v58, 0.0  ;;  %v508_v22 = vmax.f32 %v500_v20, 0.0  ;;  %v646_v20 = vunpack.c.0.s8 %v645_v17 }
 0x2ef   :  { %v703_v23 = vpack.c.bf16 %v507_v21, %v505_v55  ;;  %v701_v24 = vpack.c.bf16 %v508_v22, %v506_v62  ;;  %v649_v22 = vsub.s32 %v646_v20, %v882_v39 }
 0x2f1   :  { %702 = vmatprep.subr.bf16.mxu0 %v701_v24  ;;  %706 = vmatprep.subr.bf16.mxu1 %v701_v24 }
 0x2f2   :  { %704 = vmatpush1.bf16.msra.mxu0 %v703_v23  ;;  %708 = vmatpush1.bf16.msra.mxu1 %v703_v23 }
 0x2f5   :  { %683 = vmatmul.mubr.msk.f32.vlgmr.msra.gmra.mrb[10].mxu0 %vm311_vm3, %v509_v40  ;;  %684 = vmatmul.mubr.msk.f32.vlgmr.msra.gmra.mrb[8].mxu1 %vm311_vm3, %v510_v56 }
 0x3c8   :  { %v587_v30 = vpop.f32.mrb[10].mxu0  ;;  %v593_v31 = vpop.f32.mrb[8].mxu1 }
 0x3c9   :  { %v588_v35 = vadd.f32 %v587_v30, %v511_v25  ;;  %v594_v41 = vadd.f32 %v593_v31, %v513_v26  ;;  %v589_v3 = vpop.f32.mrb[11].mxu0  ;;  %v595_v42 = vpop.f32.mrb[9].mxu1 }
 0x3ca   :  { %v590_v44 = vadd.f32 %v589_v3, %v512_v28  ;;  %v596_v45 = vadd.f32 %v595_v42, %v514_v29 }
 0x3cb   :  { %v613_v46 = vadd.f32 %v588_v35, %v133_v34  ;;  %v598_v47 = vadd.f32 2.0, %v594_v41 }
 0x3cc   :  { %v614_v50 = vadd.f32 %v590_v44, %v135_v43  ;;  %v599_v51 = vadd.f32 2.0, %v596_v45 }
 0x3cd   :  { %v600_v53 = vsub.f32 0.0, %v598_v47 }
 0x3ce   :  { %v601_v59 = vsub.f32 0.0, %v599_v51 }
 0x3cf   :  { %v602_v61 = vmul.f32 1.442695, %v600_v53 }
 0x3d0   :  { %v604_v63 = vmul.f32 1.442695, %v601_v59 }
 0x3d1   :  { %713 = vpow2.f32 %v602_v61 }
 0x3d2   :  { %715 = vpow2.f32 %v604_v63 }
 0x3db   :  { %v714_v0 = vpop.eup %713 }
 0x3dc   :  { %v716_v12 = vpop.eup %715  ;;  %v606_v1 = vadd.f32 1.0, %v714_v0 }
 0x3dd   :  { %v607_v2 = vadd.f32 1.0, %v716_v12 }
 0x3de   :  { %717 = vrcp.f32 %v606_v1 }
 0x3df   :  { %719 = vlog2.f32 %v606_v1 }
 0x3e0   :  { %721 = vrcp.f32 %v607_v2 }
 0x3e1   :  { %723 = vlog2.f32 %v607_v2 }
 0x3e8   :  { %v718_v13 = vpop.eup %717 }
 0x3e9   :  { %v720_v4 = vpop.eup %719  ;;  %v615_v33 = vmul.f32 %v718_v13, %v613_v46 }
 0x3ea   :  { %v722_v36 = vpop.eup %721  ;;  %v622_v5 = vmul.f32 0.6931472, %v720_v4 }
 0x3eb   :  { %v724_v6 = vpop.eup %723  ;;  %v617_v52 = vsel %vm612_vm4, %v133_v34, %v615_v33  ;;  %v616_v60 = vmul.f32 %v722_v36, %v614_v50 }
 0x3ec   :  { %619 = vst [vmem:[%s1161_s8] sm:$0xff] %v617_v52  ;;  %v625_v32 = vsub.f32 0.0, %v622_v5  ;;  %v624_v37 = vmul.f32 0.6931472, %v724_v6 }
 0x3ed   :  { %v618_v7 = vsel %vm612_vm4, %v135_v43, %v616_v60 }
 0x3ee   :  { %v627_v8 = vsel %vm612_vm4, 0.0, %v625_v32  ;;  %620 = vst [vmem:[%s1161_s8 + $0x8] sm:$0xff] %v618_v7  ;;  %v626_v9 = vsub.f32 0.0, %v624_v37 }
 0x3ef   :  { %v629_v10 = vrot.slane %v627_v8, 4 }
 0x3f0   :  { %v628_v11 = vsel %vm612_vm4, 0.0, %v626_v9 }
 0x3f1   :  { %v630_v14 = vadd.f32 %v629_v10, %v627_v8  ;;  %v635_v15 = vrot.slane %v628_v11, 4 }
 0x3f3   :  { %v631_v16 = vrot.slane %v630_v14, 2  ;;  %v636_v48 = vadd.f32 %v635_v15, %v628_v11 }
 0x3f5   :  { %v632_v18 = vadd.f32 %v631_v16, %v630_v14  ;;  %v637_v19 = vrot.slane %v636_v48, 2 }
 0x3f7   :  { %v633_v54 = vrot.slane %v632_v18, 1  ;;  %v638_v58 = vadd.f32 %v637_v19, %v636_v48 }
 0x3f9   :  { %v634_v55 = vadd.f32 %v633_v54, %v632_v18  ;;  %v639_v62 = vrot.slane %v638_v58, 1 }
 0x3fb   :  { %v640_v21 = vadd.f32 %v639_v62, %v638_v58 }
 0x3fd   :  { %v643_v23 = vcombine.low %v634_v55, %v640_v21 }
 0x3ff   :  { %v650_v24 = vrot.slane %v643_v23, %v649_v22 }
 0x401   :  { %v657_v40 = vrot.slane %v650_v24, %v649_v22 }
 0x403   :  { %663 = vst.msk [vmem:[%s1162_s9] sm:$0x3] %vm661_vm5, %v657_v40 }

</bundles_post_ra>
